<compile_context>
chip_gen: v7x
topology: tpu7x:2x2x1
jax: 0.10.0
libtpu: 0.0.40
codegen_flags: <defaults>
</compile_context>

<pallas_src>
import jax
import jax.numpy as jnp
from jax.experimental import pallas as pl
from jax.experimental.pallas import tpu as pltpu

LANE = 128  # vreg lane width


def _round_up(x, m):
    return (x + m - 1) // m * m


# ---------------------------------------------------------------------------
# kernel: one batch tile of the full fused MLP
# ---------------------------------------------------------------------------
def ffnn_kernel(x_ref, w1_ref, b1_ref, w2_ref, b2_ref, w3_ref, b3_ref, o_ref):
    cdt = w1_ref.dtype  # MXU compute dtype (bf16)

    # in-kernel activation cast (hidden under the matmul, no extra HBM pass)
    x = x_ref[...].astype(cdt)

    # fc1 + ReLU  (MXU matmul with f32 accumulation; bias/ReLU in f32 on VPU)
    h = jnp.dot(x, w1_ref[...], preferred_element_type=jnp.float32)
    h = jnp.maximum(h + b1_ref[...], 0.0).astype(cdt)

    # fc2 + ReLU
    h = jnp.dot(h, w2_ref[...], preferred_element_type=jnp.float32)
    h = jnp.maximum(h + b2_ref[...], 0.0).astype(cdt)

    # fc3 (no activation) -> lane-dense store
    out = jnp.dot(h, w3_ref[...], preferred_element_type=jnp.float32)
    o_ref[...] = (out + b3_ref[...]).astype(o_ref.dtype)


# ---------------------------------------------------------------------------
# one-time parameter prep (out of the hot path):
#   transpose to [in, out], cast weights to bf16, lane-pad H and O to 128
# ---------------------------------------------------------------------------
def prepare_params(torch_params, *, compute_dtype=jnp.bfloat16):
    w1, b1 = torch_params["w1"], torch_params["b1"]   # [H, I], [H]
    w2, b2 = torch_params["w2"], torch_params["b2"]   # [H, H], [H]
    w3, b3 = torch_params["w3"], torch_params["b3"]   # [O, H], [O]
    H, I = w1.shape
    O = w3.shape[0]
    H_pad = _round_up(H, LANE)
    O_pad = _round_up(O, LANE)

    # zero-padding keeps the math exact: padded h columns are ReLU(0 + 0) = 0
    # and the corresponding w2t/w3t rows are zero, so they contribute nothing.
    w1t = jnp.zeros((I, H_pad), compute_dtype).at[:, :H].set(w1.T.astype(compute_dtype))
    b1p = jnp.zeros((1, H_pad), jnp.float32).at[:, :H].set(b1.astype(jnp.float32))
    w2t = jnp.zeros((H_pad, H_pad), compute_dtype).at[:H, :H].set(w2.T.astype(compute_dtype))
    b2p = jnp.zeros((1, H_pad), jnp.float32).at[:, :H].set(b2.astype(jnp.float32))
    w3t = jnp.zeros((H_pad, O_pad), compute_dtype).at[:H, :O].set(w3.T.astype(compute_dtype))
    b3p = jnp.zeros((1, O_pad), jnp.float32).at[:, :O].set(b3.astype(jnp.float32))

    return {
        "w1t": w1t, "b1": b1p,
        "w2t": w2t, "b2": b2p,
        "w3t": w3t, "b3": b3p,
        "output_size": O,
    }


# ---------------------------------------------------------------------------
# forward wrapper: batch-tiled grid, weights resident in VMEM
# ---------------------------------------------------------------------------
def ffnn_forward(x, prepared, *, tm=512, out_dtype=jnp.float32):
    w1t, b1 = prepared["w1t"], prepared["b1"]
    w2t, b2 = prepared["w2t"], prepared["b2"]
    w3t, b3 = prepared["w3t"], prepared["b3"]
    O = prepared["output_size"]

    B, I = x.shape
    H_pad = w1t.shape[1]
    O_pad = w3t.shape[1]

    # Batch tile: multiple of 8 sublanes. For large batches, split into at
    # least 2 (even) grid steps so both v7x TensorCores get work; on v5e/v6e
    # two big steps cost only ~0.7 us of extra pipeline overhead.
    if B >= 256:
        TM = min(tm, _round_up(pl.cdiv(B, 2), 8))
    else:
        TM = min(tm, _round_up(B, 8))
    grid = (pl.cdiv(B, TM),)   # ragged last tile handled by Pallas (no jnp.pad)

    x_spec = pl.BlockSpec((TM, I), lambda i: (i, 0))            # f32, cast in-kernel
    out_spec = pl.BlockSpec((TM, O_pad), lambda i: (i, 0))      # lane-dense store
    # Same block index every step -> weights/biases fetched once, stay in VMEM.
    resident = lambda shape: pl.BlockSpec(shape, lambda i: (0, 0))

    flops = 2 * B * (I * H_pad + H_pad * H_pad + H_pad * O_pad)
    bytes_accessed = int(
        B * I * x.dtype.itemsize
        + sum(int(a.size) * a.dtype.itemsize for a in (w1t, b1, w2t, b2, w3t, b3))
        + B * O_pad * jnp.dtype(out_dtype).itemsize
    )

    out_padded = pl.pallas_call(
        ffnn_kernel,
        out_shape=jax.ShapeDtypeStruct((B, O_pad), out_dtype),
        grid=grid,
        in_specs=[
            x_spec,
            resident((I, H_pad)), resident((1, H_pad)),          # fc1
            resident((H_pad, H_pad)), resident((1, H_pad)),      # fc2
            resident((H_pad, O_pad)), resident((1, O_pad)),      # fc3
        ],
        out_specs=out_spec,
        compiler_params=pltpu.CompilerParams(
            dimension_semantics=("parallel",),       # shard batch tiles across TCs (v7x)
            vmem_limit_bytes=16 * 1024 * 1024,       # real footprint ~2 MiB; safe on v7x's 64 MiB
        ),
        cost_estimate=pl.CostEstimate(
            flops=flops, transcendentals=0, bytes_accessed=bytes_accessed),
    )(x, w1t, b1, w2t, b2, w3t, b3)

    return out_padded[:, :O]


# ---------------------------------------------------------------------------
# init + references
# ---------------------------------------------------------------------------
def init_params(key, input_size, hidden_size, output_size):
    """PyTorch nn.Linear default init: U[-1/sqrt(fan_in), 1/sqrt(fan_in)]."""
    ks = jax.random.split(key, 6)

    def linear(kw, kb, fan_in, fan_out):
        bound = 1.0 / jnp.sqrt(fan_in)
        w = jax.random.uniform(kw, (fan_out, fan_in), jnp.float32, -bound, bound)
        b = jax.random.uniform(kb, (fan_out,), jnp.float32, -bound, bound)
        return w, b

    w1, b1 = linear(ks[0], ks[1], input_size, hidden_size)
    w2, b2 = linear(ks[2], ks[3], hidden_size, hidden_size)
    w3, b3 = linear(ks[4], ks[5], hidden_size, output_size)
    return {"w1": w1, "b1": b1, "w2": w2, "b2": b2, "w3": w3, "b3": b3}


def ffnn_reference_f32(x, p):
    h = jnp.maximum(x @ p["w1"].T + p["b1"], 0.0)
    h = jnp.maximum(h @ p["w2"].T + p["b2"], 0.0)
    return h @ p["w3"].T + p["b3"]


def ffnn_reference_bf16(x, p):
    """Same mixed-precision recipe as the kernel (bf16 MXU, f32 epilogue)."""
    cdt = jnp.bfloat16
    w1, w2, w3 = p["w1"].T.astype(cdt), p["w2"].T.astype(cdt), p["w3"].T.astype(cdt)
    h = jnp.dot(x.astype(cdt), w1, preferred_element_type=jnp.float32)
    h = jnp.maximum(h + p["b1"], 0.0).astype(cdt)
    h = jnp.dot(h, w2, preferred_element_type=jnp.float32)
    h = jnp.maximum(h + p["b2"], 0.0).astype(cdt)
    return jnp.dot(h, w3, preferred_element_type=jnp.float32) + p["b3"]


if __name__ == "__main__":
    # each input sample is flattened to (sequence_length * num_features)
    batch, seq, feat = 8, 8, 4
    input_size = seq * feat          # 32
    hidden_size = 32
    output_size = 8

    key = jax.random.PRNGKey(0)
    k_x, k_x2, k_p = jax.random.split(key, 3)
    x = jax.random.normal(k_x, (batch, input_size), jnp.float32)
    torch_params = init_params(k_p, input_size, hidden_size, output_size)

    # one-time weight prep (transpose / bf16 cast / 128-lane pad of H and O)
    prepared = prepare_params(torch_params)

    fwd = jax.jit(lambda xx: ffnn_forward(xx, prepared))
    out = jax.block_until_ready(fwd(x))

    assert out.shape == (batch, output_size)
    assert jnp.allclose(out, ffnn_reference_bf16(x, torch_params), atol=1e-2, rtol=1e-2), \
        "mismatch vs bf16 reference"
    assert jnp.allclose(out, ffnn_reference_f32(x, torch_params), atol=1e-1, rtol=1e-1), \
        "mismatch vs f32 reference"

    # larger batch: 2 even grid steps (both v7x TCs busy), weights stay resident
    big_b = 512
    xb = jax.random.normal(k_x2, (big_b, input_size), jnp.float32)
    out_b = jax.block_until_ready(jax.jit(lambda xx: ffnn_forward(xx, prepared))(xb))
    assert out_b.shape == (big_b, output_size)
    assert jnp.allclose(out_b, ffnn_reference_bf16(xb, torch_params), atol=1e-2, rtol=1e-2), \
        "mismatch vs bf16 reference (tiled batch)"

    # ragged batch (not a multiple of 8 / of the tile): exercises the cdiv
    # boundary block without any wrapper-side padding
    rag_b = 37
    xr = jax.random.normal(jax.random.PRNGKey(3), (rag_b, input_size), jnp.float32)
    out_r = jax.block_until_ready(jax.jit(lambda xx: ffnn_forward(xx, prepared))(xr))
    assert out_r.shape == (rag_b, output_size)
    assert jnp.allclose(out_r, ffnn_reference_bf16(xr, torch_params), atol=1e-2, rtol=1e-2), \
        "mismatch vs bf16 reference (ragged batch)"

    print("KERNEL_OK")
</pallas_src>

<mosaic_0001>
module attributes {stable_mosaic.version = 11 : i64} {
  func.func @ffnn_kernel(%arg0: i32, %arg1: memref<8x32xf32, #tpu.memory_space<vmem>>, %arg2: memref<32x128xbf16, #tpu.memory_space<vmem>>, %arg3: memref<1x128xf32, #tpu.memory_space<vmem>>, %arg4: memref<128x128xbf16, #tpu.memory_space<vmem>>, %arg5: memref<1x128xf32, #tpu.memory_space<vmem>>, %arg6: memref<128x128xbf16, #tpu.memory_space<vmem>>, %arg7: memref<1x128xf32, #tpu.memory_space<vmem>>, %arg8: memref<8x128xf32, #tpu.memory_space<vmem>>) attributes {dimension_semantics = [#tpu.dimension_semantics<parallel>], iteration_bounds = array<i64: 1>, scalar_prefetch = 0 : i64, scratch_operands = 0 : i64, tpu.core_type = #tpu.core_type<tc>, window_params = [{transform_indices = @transform_0, window_bounds = array<i64: 8, 32>}, {pipeline_mode = #tpu.pipeline_mode<synchronous>, transform_indices = @transform_1, window_bounds = array<i64: 32, 128>}, {pipeline_mode = #tpu.pipeline_mode<synchronous>, transform_indices = @transform_2, window_bounds = array<i64: 1, 128>}, {pipeline_mode = #tpu.pipeline_mode<synchronous>, transform_indices = @transform_3, window_bounds = array<i64: 128, 128>}, {pipeline_mode = #tpu.pipeline_mode<synchronous>, transform_indices = @transform_4, window_bounds = array<i64: 1, 128>}, {pipeline_mode = #tpu.pipeline_mode<synchronous>, transform_indices = @transform_5, window_bounds = array<i64: 128, 128>}, {pipeline_mode = #tpu.pipeline_mode<synchronous>, transform_indices = @transform_6, window_bounds = array<i64: 1, 128>}, {transform_indices = @transform_7, window_bounds = array<i64: 8, 128>}]} {
    %c0 = arith.constant 0 : index
    %c0_0 = arith.constant 0 : index
    %0 = vector.load %arg1[%c0, %c0_0] : memref<8x32xf32, #tpu.memory_space<vmem>>, vector<8x32xf32>
    %1 = arith.truncf %0 : vector<8x32xf32> to vector<8x32xbf16>
    %c0_1 = arith.constant 0 : index
    %c0_2 = arith.constant 0 : index
    %2 = vector.load %arg2[%c0_1, %c0_2] : memref<32x128xbf16, #tpu.memory_space<vmem>>, vector<32x128xbf16>
    %cst = arith.constant dense<0.000000e+00> : vector<8x128xf32>
    %3 = tpu.matmul %1, %2, %cst {dimension_numbers = #tpu.dot_dimension_numbers<[1], [0], [0], [1], [0, 0, 1, 1], [], []>} : vector<8x32xbf16>, vector<32x128xbf16>, vector<8x128xf32> -> vector<8x128xf32>
    %c0_3 = arith.constant 0 : index
    %c0_4 = arith.constant 0 : index
    %4 = vector.load %arg3[%c0_3, %c0_4] : memref<1x128xf32, #tpu.memory_space<vmem>>, vector<1x128xf32>
    %5 = vector.broadcast %4 : vector<1x128xf32> to vector<8x128xf32>
    %6 = arith.addf %3, %5 : vector<8x128xf32>
    %cst_5 = arith.constant 0.000000e+00 : f32
    %7 = vector.broadcast %cst_5 : f32 to vector<8x128xf32>
    %8 = arith.maximumf %6, %7 : vector<8x128xf32>
    %9 = arith.truncf %8 : vector<8x128xf32> to vector<8x128xbf16>
    %c0_6 = arith.constant 0 : index
    %c0_7 = arith.constant 0 : index
    %10 = vector.load %arg4[%c0_6, %c0_7] : memref<128x128xbf16, #tpu.memory_space<vmem>>, vector<128x128xbf16>
    %cst_8 = arith.constant dense<0.000000e+00> : vector<8x128xf32>
    %11 = tpu.matmul %9, %10, %cst_8 {dimension_numbers = #tpu.dot_dimension_numbers<[1], [0], [0], [1], [0, 0, 1, 1], [], []>} : vector<8x128xbf16>, vector<128x128xbf16>, vector<8x128xf32> -> vector<8x128xf32>
    %c0_9 = arith.constant 0 : index
    %c0_10 = arith.constant 0 : index
    %12 = vector.load %arg5[%c0_9, %c0_10] : memref<1x128xf32, #tpu.memory_space<vmem>>, vector<1x128xf32>
    %13 = vector.broadcast %12 : vector<1x128xf32> to vector<8x128xf32>
    %14 = arith.addf %11, %13 : vector<8x128xf32>
    %cst_11 = arith.constant 0.000000e+00 : f32
    %15 = vector.broadcast %cst_11 : f32 to vector<8x128xf32>
    %16 = arith.maximumf %14, %15 : vector<8x128xf32>
    %17 = arith.truncf %16 : vector<8x128xf32> to vector<8x128xbf16>
    %c0_12 = arith.constant 0 : index
    %c0_13 = arith.constant 0 : index
    %18 = vector.load %arg6[%c0_12, %c0_13] : memref<128x128xbf16, #tpu.memory_space<vmem>>, vector<128x128xbf16>
    %cst_14 = arith.constant dense<0.000000e+00> : vector<8x128xf32>
    %19 = tpu.matmul %17, %18, %cst_14 {dimension_numbers = #tpu.dot_dimension_numbers<[1], [0], [0], [1], [0, 0, 1, 1], [], []>} : vector<8x128xbf16>, vector<128x128xbf16>, vector<8x128xf32> -> vector<8x128xf32>
    %c0_15 = arith.constant 0 : index
    %c0_16 = arith.constant 0 : index
    %20 = vector.load %arg7[%c0_15, %c0_16] : memref<1x128xf32, #tpu.memory_space<vmem>>, vector<1x128xf32>
    %21 = vector.broadcast %20 : vector<1x128xf32> to vector<8x128xf32>
    %22 = arith.addf %19, %21 : vector<8x128xf32>
    %c0_17 = arith.constant 0 : index
    %c0_18 = arith.constant 0 : index
    %23 = vector.load %arg8[%c0_17, %c0_18] : memref<8x128xf32, #tpu.memory_space<vmem>>, vector<8x128xf32>
    tpu.vector_store %arg8[%c0_17, %c0_18], %22 {strides = array<i32>} : memref<8x128xf32, #tpu.memory_space<vmem>>, vector<8x128xf32>,
    return
  }
  func.func @transform_0(%arg0: i32) -> (i32, i32) {
    %c0_i32 = arith.constant 0 : i32
    %c0_i32_0 = arith.constant 0 : i32
    return %arg0, %c0_i32 : i32, i32
  }
  func.func @transform_1(%arg0: i32) -> (i32, i32) {
    %c0_i32 = arith.constant 0 : i32
    %c0_i32_0 = arith.constant 0 : i32
    %c0_i32_1 = arith.constant 0 : i32
    return %c0_i32, %c0_i32_0 : i32, i32
  }
  func.func @transform_2(%arg0: i32) -> (i32, i32) {
    %c0_i32 = arith.constant 0 : i32
    %c0_i32_0 = arith.constant 0 : i32
    %c0_i32_1 = arith.constant 0 : i32
    return %c0_i32, %c0_i32_0 : i32, i32
  }
  func.func @transform_3(%arg0: i32) -> (i32, i32) {
    %c0_i32 = arith.constant 0 : i32
    %c0_i32_0 = arith.constant 0 : i32
    %c0_i32_1 = arith.constant 0 : i32
    return %c0_i32, %c0_i32_0 : i32, i32
  }
  func.func @transform_4(%arg0: i32) -> (i32, i32) {
    %c0_i32 = arith.constant 0 : i32
    %c0_i32_0 = arith.constant 0 : i32
    %c0_i32_1 = arith.constant 0 : i32
    return %c0_i32, %c0_i32_0 : i32, i32
  }
  func.func @transform_5(%arg0: i32) -> (i32, i32) {
    %c0_i32 = arith.constant 0 : i32
    %c0_i32_0 = arith.constant 0 : i32
    %c0_i32_1 = arith.constant 0 : i32
    return %c0_i32, %c0_i32_0 : i32, i32
  }
  func.func @transform_6(%arg0: i32) -> (i32, i32) {
    %c0_i32 = arith.constant 0 : i32
    %c0_i32_0 = arith.constant 0 : i32
    %c0_i32_1 = arith.constant 0 : i32
    return %c0_i32, %c0_i32_0 : i32, i32
  }
  func.func @transform_7(%arg0: i32) -> (i32, i32) {
    %c0_i32 = arith.constant 0 : i32
    %c0_i32_0 = arith.constant 0 : i32
    return %arg0, %c0_i32 : i32, i32
  }
}

</mosaic_0001>

<bundles_post_ra>
// kernel: _lambda_.1
= control target key start
LH: loop header
LB: loop body
LE: loop exit
PB: predicated region body
PF: predicated region fallthrough
CT: control target
= control target key end

     0   :  { %12 = vsyncpa [#allocation3], 0  ;;  %s731_s0 = inlined_call_operand.vmem [shape: f32[8,32], index: 0, kind: input, shape index: {}]   ;;  %s732_s1 = inlined_call_operand.vmem [shape: bf16[32,128], index: 1, kind: input, shape index: {}]   ;;  %s733_s2 = inlined_call_operand.hbm [shape: f32[1,128], index: 2, kind: input, shape index: {}]   ;;  %s734_s3 = inlined_call_operand.hbm [shape: bf16[128,128], index: 3, kind: input, shape index: {}]   ;;  %s735_s4 = inlined_call_operand.vmem [shape: f32[1,128], index: 4, kind: input, shape index: {}]   ;;  %s736_s5 = inlined_call_operand.hbm [shape: bf16[128,128], index: 5, kind: input, shape index: {}]   ;;  %s737_s6 = inlined_call_operand.vmem [shape: f32[1,128], index: 6, kind: input, shape index: {}]   ;;  %s738_s7 = inlined_call_operand.hbm [shape: f32[8,128], index: 7, kind: output, shape index: {}]  }
   0x1   :  { %13 = vsyncpa [#allocation6], 0 }
   0x2   :  { %14 = vsyncpa [#allocation4], 0  ;;  %s590_s24 = smov [#allocation5]   ;;  %s496_s28 = scalar_lea.hbm %s734_s3, 1024 }
   0x3   :  { %s34_s25 = sshll.u32 %s590_s24, 4  ;;  %p497_p0 = scmp.ne.s32.totalorder %s734_s3, %s496_s28  ;;  %s35_s25 = int_to_ptr.vmem [resolvable:$true] %s34_s25 }
   0x4   :  { %p500_p1 = scmp.lt.u32.totalorder %s496_s28, %s734_s3 }
   0x6   :  { %p502_p2 = pnand %p500_p1, %p497_p0 }
   0x8   :  { %505 = shalt.err (!%p502_p2)
}
   0x9   :  { %s506_s10 = scalar_lea.vmem %s35_s25, 1024  ;;  %p511_p4 = scmp.lt.s32.totalorder %s35_s25, %s35_s25 }
   0xa   :  { %p507_p3 = scmp.ne.s32.totalorder %s35_s25, %s506_s10  ;;  %p512_p5 = scmp.lt.s32.totalorder %s506_s10, %s506_s10 }
   0xc   :  { %p513_p6 = por %p512_p5, %p511_p4 }
   0xe   :  { %p514_p7 = pnand %p513_p6, %p507_p3 }
  0x10   :  { %517 = shalt.err (!%p514_p7)
}
  0x11   :  { %s591_s11 = smov 64   ;;  %s592_s12 = smov 4  }
  0x12   :  { %40 = dma.hbm_to_vmem [thread:$0]  %s734_s3, 1024, %s35_s25, [#allocation6], %s591_s11, %s591_s11, %s592_s12  }
  0x13   :  { %s593_s15 = smov [#allocation2]   ;;  %s594_s17 = smov [#allocation7]  }
  0x14   :  { %s25_s16 = sshll.u32 %s593_s15, 4  ;;  %s48_s18 = sshll.u32 %s594_s17, 4  ;;  %s26_s16 = int_to_ptr.vmem [resolvable:$true] %s25_s16  ;;  %s49_s18 = int_to_ptr.vmem [resolvable:$true] %s48_s18 }
  0x15   :  { %s518_s21 = scalar_lea.hbm %s733_s2, 16 }
  0x16   :  { %p519_p8 = scmp.ne.s32.totalorder %s733_s2, %s518_s21  ;;  %p522_p9 = scmp.lt.u32.totalorder %s518_s21, %s733_s2 }
  0x18   :  { %p524_p10 = pnand %p522_p9, %p519_p8 }
  0x1a   :  { %527 = shalt.err (!%p524_p10)
}
  0x1b   :  { %s528_s3 = scalar_lea.vmem %s26_s16, 16  ;;  %s532_s25 = scalar_lea.vmem %s26_s16, 32 }
  0x1c   :  { %p529_p11 = scmp.ne.s32.totalorder %s26_s16, %s528_s3  ;;  %p533_p12 = scmp.lt.s32.totalorder %s26_s16, %s26_s16 }
  0x1d   :  { %p534_p13 = scmp.lt.s32.totalorder %s532_s25, %s528_s3 }
  0x1f   :  { %p535_p0 = por %p534_p13, %p533_p12 }
  0x21   :  { %p536_p1 = pnand %p535_p0, %p529_p11 }
  0x23   :  { %539 = shalt.err (!%p536_p1)
}
  0x24   :  { %28 = dma.hbm_to_vmem [thread:$0]  %s733_s2, 16, %s26_s16, [#allocation3]  }
  0x25   :  { %s540_s8 = scalar_lea.hbm %s736_s5, 1024 }
  0x26   :  { %p541_p2 = scmp.ne.s32.totalorder %s736_s5, %s540_s8  ;;  %p544_p3 = scmp.lt.u32.totalorder %s540_s8, %s736_s5 }
  0x28   :  { %p546_p4 = pnand %p544_p3, %p541_p2 }
  0x2a   :  { %549 = shalt.err (!%p546_p4)
}
  0x2b   :  { %s550_s15 = scalar_lea.vmem %s49_s18, 1024  ;;  %p555_p6 = scmp.lt.s32.totalorder %s49_s18, %s49_s18 }
  0x2c   :  { %p551_p5 = scmp.ne.s32.totalorder %s49_s18, %s550_s15  ;;  %p556_p7 = scmp.lt.s32.totalorder %s550_s15, %s550_s15 }
  0x2e   :  { %p557_p8 = por %p556_p7, %p555_p6 }
  0x30   :  { %p558_p9 = pnand %p557_p8, %p551_p5 }
  0x32   :  { %561 = shalt.err (!%p558_p9)
}
  0x33   :  { %54 = dma.hbm_to_vmem [thread:$0]  %s736_s5, 1024, %s49_s18, [#allocation6], %s591_s11, %s591_s11, %s592_s12  }
  0x34   :  { %584 = dma.done.wait [#allocation3], 16  }
  0x35   :  { %585 = vsyncadd [#allocation3], 4294967280 }
  0x36   :  { %586 = dma.done.wait [#allocation6], 2048  }
  0x37   :  { %587 = vsyncadd [#allocation6], 4294965248  ;;  %v595_v0 = vmov 0.0   ;;  %vm596_vm0 = vmmov 0   ;;  %v478_v1 = vld [vmem:[%s732_s1] sm:$0xff]   ;;  %v479_v2 = vld [vmem:[%s732_s1 + $0x8] sm:$0xff]  }
  0x38   :  { %422 = vmatprep.subr.bf16.mxu0 %v595_v0  ;;  %426 = vmatprep.mubr.msk.bf16.mxu0 %vm596_vm0, %v595_v0  ;;  %v67_v3 = vld [vmem:[%s731_s0] sm:$0xff]  ;;  %v481_v6 = vld [vmem:[#allocation5 + $0x8] sm:$0xff]   ;;  %vm92_vm1 = vcmask 261120   ;;  %v482_v7 = vld [vmem:[#allocation5 + $0x10] sm:$0xff]   ;;  %s597_s22 = smov [#allocation8]  }
  0x39   :  { %430 = vmatprep.subr.bf16.mxu1 %v595_v0  ;;  %446 = vmatprep.mubr.msk.bf16.mxu1 %vm596_vm0, %v595_v0  ;;  %v480_v4 = vld [vmem:[#allocation5] sm:$0xff]   ;;  %v68_v5 = vpack.c.bf16 %v67_v3, %v67_v3  ;;  %v483_v8 = vld [vmem:[#allocation5 + $0x18] sm:$0xff]   ;;  %v485_v10 = vld [vmem:[#allocation5 + $0x28] sm:$0xff]   ;;  %s369_s23 = sshll.u32 %s597_s22, 4  ;;  %s370_s23 = int_to_ptr.vmem [resolvable:$true] %s369_s23 }
  0x3a   :  { %423 = vmatpush3.bf16.msra.mxu0 %v478_v1  ;;  %431 = vmatpush3.bf16.msra.mxu1 %v480_v4  ;;  %v484_v9 = vld [vmem:[#allocation5 + $0x20] sm:$0xff]   ;;  %v486_v11 = vld [vmem:[#allocation5 + $0x30] sm:$0xff]   ;;  %v487_v12 = vld [vmem:[#allocation5 + $0x38] sm:$0xff]   ;;  %p567_p11 = scmp.lt.s32.totalorder %s370_s23, %s370_s23 }
  0x3b   :  { %424 = vmatprep.subr.bf16.mxu0 %v595_v0  ;;  %432 = vmatprep.subr.bf16.mxu1 %v595_v0  ;;  %v488_v13 = vld [vmem:[#allocation7] sm:$0xff]   ;;  %v489_v14 = vld [vmem:[#allocation7 + $0x8] sm:$0xff]   ;;  %v490_v15 = vld [vmem:[#allocation7 + $0x10] sm:$0xff]  }
  0x3c   :  { %v491_v16 = vld [vmem:[#allocation7 + $0x18] sm:$0xff]   ;;  %v492_v17 = vld [vmem:[#allocation7 + $0x20] sm:$0xff]   ;;  %v493_v18 = vld [vmem:[#allocation7 + $0x28] sm:$0xff]  }
  0x3d   :  { %v379_v19 = vld [vmem:[#allocation2] ss:$0 sm:$0xff]  ;;  %v494_v27 = vld [vmem:[#allocation7 + $0x30] sm:$0xff]  }
  0x3e   :  { %425 = vmatpush3.bf16.msra.mxu0 %v479_v2  ;;  %433 = vmatpush3.bf16.msra.mxu1 %v481_v6  ;;  %v495_v28 = vld [vmem:[#allocation7 + $0x38] sm:$0xff]  }
  0x3f   :  { %450 = vmatprep.subr.bf16.mxu0 %v595_v0  ;;  %434 = vmatprep.subr.bf16.mxu1 %v595_v0  ;;  %v383_v29 = vld [vmem:[%s735_s4] ss:$0 sm:$0xff]  ;;  %s562_s4 = scalar_lea.vmem %s370_s23, 128 }
  0x40   :  { %v392_v37 = vld [vmem:[%s737_s6] ss:$0 sm:$0xff]  ;;  %p563_p10 = scmp.ne.s32.totalorder %s370_s23, %s562_s4  ;;  %p568_p12 = scmp.lt.s32.totalorder %s562_s4, %s562_s4 }
  0x41   :  { %427 = vmatmul.mubr.msk.bf16.vlgmr.msra.gmra.mrb[0].mxu0 %vm92_vm1, %v68_v5 }
  0x42   :  { %466 = vmatprep.mubr.msk.bf16.mxu0 %vm596_vm0, %v595_v0  ;;  %435 = vmatpush3.bf16.msra.mxu1 %v482_v7  ;;  %p569_p13 = por %p568_p12, %p567_p11 }
  0x43   :  { %436 = vmatprep.subr.bf16.mxu1 %v595_v0  ;;  %451 = vmatpush3.bf16.msra.mxu0 %v488_v13 }
  0x44   :  { %452 = vmatprep.subr.bf16.mxu0 %v595_v0  ;;  %p570_p0 = pnand %p569_p13, %p563_p10 }
  0x46   :  { %437 = vmatpush3.bf16.msra.mxu1 %v483_v8 }
  0x47   :  { %438 = vmatprep.subr.bf16.mxu1 %v595_v0  ;;  %453 = vmatpush3.bf16.msra.mxu0 %v489_v14 }
  0x48   :  { %454 = vmatprep.subr.bf16.mxu0 %v595_v0 }
  0x4a   :  { %439 = vmatpush3.bf16.msra.mxu1 %v484_v9 }
  0x4b   :  { %440 = vmatprep.subr.bf16.mxu1 %v595_v0  ;;  %455 = vmatpush3.bf16.msra.mxu0 %v490_v15 }
  0x4c   :  { %456 = vmatprep.subr.bf16.mxu0 %v595_v0 }
  0x4e   :  { %441 = vmatpush3.bf16.msra.mxu1 %v485_v10 }
  0x4f   :  { %442 = vmatprep.subr.bf16.mxu1 %v595_v0  ;;  %457 = vmatpush3.bf16.msra.mxu0 %v491_v16 }
  0x50   :  { %458 = vmatprep.subr.bf16.mxu0 %v595_v0 }
  0x52   :  { %443 = vmatpush3.bf16.msra.mxu1 %v486_v11 }
  0x53   :  { %444 = vmatprep.subr.bf16.mxu1 %v595_v0  ;;  %459 = vmatpush3.bf16.msra.mxu0 %v492_v17 }
  0x54   :  { %460 = vmatprep.subr.bf16.mxu0 %v595_v0 }
  0x56   :  { %445 = vmatpush3.bf16.msra.mxu1 %v487_v12 }
  0x57   :  { %461 = vmatpush3.bf16.msra.mxu0 %v493_v18 }
  0x58   :  { %462 = vmatprep.subr.bf16.mxu0 %v595_v0 }
  0x5b   :  { %463 = vmatpush3.bf16.msra.mxu0 %v494_v27 }
  0x5c   :  { %464 = vmatprep.subr.bf16.mxu0 %v595_v0 }
  0x5f   :  { %465 = vmatpush3.bf16.msra.mxu0 %v495_v28 }
 0x114   :  { %v130_v20 = vpop.f32.mrb[0].mxu0 }
 0x115   :  { %v131_v21 = vadd.f32 %v379_v19, %v130_v20  ;;  %v428_v22 = vpop.f32.mrb[1].mxu0 }
 0x116   :  { %v133_v23 = vpop.f32.mrb[2].mxu0 }
 0x117   :  { %v136_v24 = vmax.f32 %v131_v21, 0.0  ;;  %v429_v25 = vpop.f32.mrb[3].mxu0 }
 0x119   :  { %v137_v26 = vpack.c.bf16 %v136_v24, %v136_v24 }
 0x11b   :  { %447 = vmatmul.mubr.bf16.vlgmr.msra.gmra.mrb[0].mxu1 %v137_v26 }
 0x1ee   :  { %v243_v30 = vpop.f32.mrb[0].mxu1 }
 0x1ef   :  { %v244_v31 = vadd.f32 %v383_v29, %v243_v30  ;;  %v448_v32 = vpop.f32.mrb[1].mxu1 }
 0x1f0   :  { %v246_v33 = vpop.f32.mrb[2].mxu1 }
 0x1f1   :  { %v249_v34 = vmax.f32 %v244_v31, 0.0  ;;  %v449_v35 = vpop.f32.mrb[3].mxu1 }
 0x1f3   :  { %v250_v36 = vpack.c.bf16 %v249_v34, %v249_v34 }
 0x1f5   :  { %467 = vmatmul.mubr.bf16.vlgmr.msra.gmra.mrb[4].mxu0 %v250_v36 }
 0x2c8   :  { %v356_v38 = vpop.f32.mrb[4].mxu0 }
 0x2c9   :  { %v357_v39 = vadd.f32 %v392_v37, %v356_v38  ;;  %v468_v40 = vpop.f32.mrb[5].mxu0 }
 0x2ca   :  { %v359_v41 = vpop.f32.mrb[6].mxu0 }
 0x2cb   :  { %362 = vst [vmem:[#allocation8] sm:$0xff] %v357_v39  ;;  %v469_v42 = vpop.f32.mrb[7].mxu0 }
 0x2cc   :  { %573 = shalt.err (!%p570_p0)
}
 0x2cd   :  { %s574_s6 = scalar_lea.hbm %s738_s7, 128 }
 0x2ce   :  { %p575_p1 = scmp.ne.s32.totalorder %s738_s7, %s574_s6  ;;  %p578_p2 = scmp.lt.u32.totalorder %s574_s6, %s738_s7 }
 0x2d0   :  { %p580_p3 = pnand %p578_p2, %p575_p1 }
 0x2d2   :  { %583 = shalt.err (!%p580_p3)
}
 0x2d3   :  { %372 = dma.vmem_to_hbm [thread:$0]  %s370_s23, 128, %s738_s7, [#allocation4]  }
 0x2d4   :  { %588 = dma.done.wait [#allocation4], 128  }
 0x2d5   :  { %589 = vsyncadd [#allocation4], 4294967168 }
 0x2d6   :  { %376 = vsyncpa [#allocation3], 1 }
 0x2d7   :  { %377 = vsyncpa [#allocation6], 1 }
 0x2d8   :  { %378 = vsyncpa [#allocation4], 1 }

</bundles_post_ra>
